<compile_context>
chip_gen: v6e
topology: v6e:2x2x1
jax: 0.10.0
libtpu: 0.0.40
codegen_flags: <defaults>
</compile_context>

<pallas_src>
import functools
import math

import jax
import jax.numpy as jnp
from jax import lax
from jax.experimental import pallas as pl
from jax.experimental.pallas import tpu as pltpu


def _diff_attn_kernel(lam_ref, q1_ref, q2_ref, k1_ref, k2_ref, v_ref,
                      o_ref,
                      m1_s, l1_s, acc1_s,
                      m2_s, l2_s, acc2_s,
                      *, tk_valid, tk_tile, mask_kv):
    kv = pl.program_id(2)
    n_kv = pl.num_programs(2)

    # ---- init the two sets of online-softmax running stats once per q-tile.
    @pl.when(kv == 0)
    def _init():
        m1_s[...] = jnp.full_like(m1_s, -jnp.inf)
        m2_s[...] = jnp.full_like(m2_s, -jnp.inf)
        l1_s[...] = jnp.zeros_like(l1_s)
        l2_s[...] = jnp.zeros_like(l2_s)
        acc1_s[...] = jnp.zeros_like(acc1_s)
        acc2_s[...] = jnp.zeros_like(acc2_s)

    q1 = q1_ref[0]                        # (TQ, hd) bf16, pre-scaled by 1/sqrt(hd)
    q2 = q2_ref[0]
    k1 = k1_ref[0]                        # (TK, hd) bf16
    k2 = k2_ref[0]
    v = v_ref[0]                          # (TK, Hd) bf16

    # Contract the last dims of both operands -> no materialized k.T.
    dn = (((1,), (1,)), ((), ()))
    s1 = lax.dot_general(q1, k1, dn, preferred_element_type=jnp.float32)
    s2 = lax.dot_general(q2, k2, dn, preferred_element_type=jnp.float32)

    # Mask padded kv columns (code only emitted when the wrapper actually padded Tk).
    if mask_kv:
        col = kv * tk_tile + lax.broadcasted_iota(jnp.int32, s1.shape, 1)
        valid = col < tk_valid
        s1 = jnp.where(valid, s1, -1e30)
        s2 = jnp.where(valid, s2, -1e30)

    def _online_update(s, m_s, l_s, acc_s):
        m_prev = m_s[...]
        m_new = jnp.maximum(m_prev, jnp.max(s, axis=-1, keepdims=True))
        alpha = jnp.exp(m_prev - m_new)
        p = jnp.exp(s - m_new)
        l_s[...] = alpha * l_s[...] + jnp.sum(p, axis=-1, keepdims=True)
        acc_s[...] = alpha * acc_s[...] + jnp.dot(
            p.astype(v.dtype), v, preferred_element_type=jnp.float32)
        m_s[...] = m_new

    _online_update(s1, m1_s, l1_s, acc1_s)
    _online_update(s2, m2_s, l2_s, acc2_s)

    # ---- finalize: combine the two branches with the differential lambda.
    @pl.when(kv == n_kv - 1)
    def _finalize():
        lam = lam_ref[0, 0]
        # Exact f32 divides (once per q-tile); lambda folded into the (TQ,1) scalar
        # before broadcasting so only one extra (TQ,Hd) multiply remains.
        r1 = 1.0 / l1_s[...]
        r2 = lam / l2_s[...]
        out = acc1_s[...] * r1 - acc2_s[...] * r2
        # nn.Dropout(p=0.0) / eval mode -> identity.
        o_ref[0] = out.astype(o_ref.dtype)


def _round_up(n, m):
    return ((n + m - 1) // m) * m


def diff_cross_attention(x, enc, params, *, tq_target=256, tk_target=512):
    """x: (B, Tq, E) f32, enc: (B, Tk, E) f32 -> (B, Tq, head_dim) f32."""
    B, Tq, E = x.shape
    _, Tk, _ = enc.shape
    Hd = params["wq"].shape[1]
    assert Hd % 2 == 0, "head_dim must be even for the differential split"
    hd = Hd // 2
    scale = 1.0 / math.sqrt(hd)

    # ---- grid-invariant differential lambda, hoisted to a single SMEM scalar.
    lam = (jnp.exp(jnp.sum(params["lq1"] * params["lk1"]))
           - jnp.exp(jnp.sum(params["lq2"] * params["lk2"]))
           + params["linit"][0, 0]).reshape(1, 1).astype(jnp.float32)

    # ---- hoist ALL projections out of the kv loop (plain XLA matmuls, f32 math).
    q = x @ params["wq"] + params["bq"]            # (B, Tq, Hd)
    k = enc @ params["wk"] + params["bk"]          # (B, Tk, Hd)
    v = enc @ params["wv"] + params["bv"]          # (B, Tk, Hd)

    cdt = jnp.bfloat16
    q1 = (q[..., :hd] * scale).astype(cdt)         # pre-scaled by 1/sqrt(hd)
    q2 = (q[..., hd:] * scale).astype(cdt)
    k1 = k[..., :hd].astype(cdt)
    k2 = k[..., hd:].astype(cdt)
    v = v.astype(cdt)

    # ---- tile sizes (multiples of 8) + padding instead of full-extent fallback.
    TQ = min(tq_target, _round_up(Tq, 8))
    TK = min(tk_target, _round_up(Tk, 8))
    Tq_pad = _round_up(Tq, TQ)
    Tk_pad = _round_up(Tk, TK)

    if Tq_pad != Tq:
        pq = [(0, 0), (0, Tq_pad - Tq), (0, 0)]
        q1 = jnp.pad(q1, pq)
        q2 = jnp.pad(q2, pq)
    mask_kv = Tk_pad != Tk
    if mask_kv:
        pk = [(0, 0), (0, Tk_pad - Tk), (0, 0)]
        k1 = jnp.pad(k1, pk)
        k2 = jnp.pad(k2, pk)
        v = jnp.pad(v, pk)

    grid = (B, Tq_pad // TQ, Tk_pad // TK)
    n_q_tiles = Tq_pad // TQ

    # Advisory cost estimate so XLA overlaps the hoisted projections with the kernel.
    cost = pl.CostEstimate(
        flops=int(4 * B * Tq_pad * Tk_pad * (hd + Hd)),
        transcendentals=int(2 * B * Tq_pad * Tk_pad),
        bytes_accessed=int(B * Tq_pad * 2 * hd * 2
                           + n_q_tiles * B * Tk_pad * (2 * hd + Hd) * 2
                           + B * Tq_pad * Hd * 4),
    )

    kernel = pl.pallas_call(
        functools.partial(_diff_attn_kernel,
                          tk_valid=Tk, tk_tile=TK, mask_kv=mask_kv),
        out_shape=jax.ShapeDtypeStruct((B, Tq_pad, Hd), jnp.float32),
        grid=grid,
        in_specs=[
            pl.BlockSpec(memory_space=pltpu.MemorySpace.SMEM),            # lambda
            pl.BlockSpec((1, TQ, hd), lambda b, qi, kv: (b, qi, 0)),      # q1
            pl.BlockSpec((1, TQ, hd), lambda b, qi, kv: (b, qi, 0)),      # q2
            pl.BlockSpec((1, TK, hd), lambda b, qi, kv: (b, kv, 0)),      # k1
            pl.BlockSpec((1, TK, hd), lambda b, qi, kv: (b, kv, 0)),      # k2
            pl.BlockSpec((1, TK, Hd), lambda b, qi, kv: (b, kv, 0)),      # v
        ],
        out_specs=pl.BlockSpec((1, TQ, Hd), lambda b, qi, kv: (b, qi, 0)),
        scratch_shapes=[
            pltpu.VMEM((TQ, 1), jnp.float32),    # m1
            pltpu.VMEM((TQ, 1), jnp.float32),    # l1
            pltpu.VMEM((TQ, Hd), jnp.float32),   # acc1
            pltpu.VMEM((TQ, 1), jnp.float32),    # m2
            pltpu.VMEM((TQ, 1), jnp.float32),    # l2
            pltpu.VMEM((TQ, Hd), jnp.float32),   # acc2
        ],
        compiler_params=pltpu.CompilerParams(
            dimension_semantics=("parallel", "parallel", "arbitrary")),
        cost_estimate=cost,
    )
    out = kernel(lam, q1, q2, k1, k2, v)
    if Tq_pad != Tq:
        out = out[:, :Tq, :]
    return out


def _reference(x, enc, p):
    """Pure-JAX f32 mirror of the PyTorch forward (for verification)."""
    lam = (jnp.exp(jnp.sum(p["lq1"] * p["lk1"]))
           - jnp.exp(jnp.sum(p["lq2"] * p["lk2"]))
           + p["linit"][0, 0])
    q = x @ p["wq"] + p["bq"]
    k = enc @ p["wk"] + p["bk"]
    v = enc @ p["wv"] + p["bv"]
    hd = q.shape[-1] // 2
    q1, q2 = q[..., :hd], q[..., hd:]
    k1, k2 = k[..., :hd], k[..., hd:]
    s1 = q1 @ jnp.swapaxes(k1, -2, -1) / math.sqrt(hd)
    s2 = q2 @ jnp.swapaxes(k2, -2, -1) / math.sqrt(hd)
    w = jax.nn.softmax(s1, axis=-1) - lam * jax.nn.softmax(s2, axis=-1)
    return w @ v


def _make_params(key, embed_dim, head_dim, lambda_init_cfg, layer_index):
    ks = jax.random.split(key, 10)
    return {
        # nn.Linear(embed_dim, head_dim): torch weight is (head_dim, embed_dim);
        # stored here pre-transposed as (embed_dim, head_dim).
        "wq": 0.1 * jax.random.normal(ks[0], (embed_dim, head_dim), jnp.float32),
        "bq": 0.1 * jax.random.normal(ks[1], (1, head_dim), jnp.float32),
        "wk": 0.1 * jax.random.normal(ks[2], (embed_dim, head_dim), jnp.float32),
        "bk": 0.1 * jax.random.normal(ks[3], (1, head_dim), jnp.float32),
        "wv": 0.1 * jax.random.normal(ks[4], (embed_dim, head_dim), jnp.float32),
        "bv": 0.1 * jax.random.normal(ks[5], (1, head_dim), jnp.float32),
        "lq1": 0.1 * jax.random.normal(ks[6], (1, head_dim), jnp.float32),
        "lk1": 0.1 * jax.random.normal(ks[7], (1, head_dim), jnp.float32),
        "lq2": 0.1 * jax.random.normal(ks[8], (1, head_dim), jnp.float32),
        "lk2": 0.1 * jax.random.normal(ks[9], (1, head_dim), jnp.float32),
        "linit": jnp.full(
            (1, 1),
            lambda_init_cfg - 0.6 * math.exp(-0.3 * layer_index),
            jnp.float32),
    }


if __name__ == "__main__":
    embed_dim, head_dim = 32, 16
    lambda_init_cfg, layer_index = 0.8, 0

    key = jax.random.PRNGKey(0)
    kp, kx1, ke1, kx2, ke2 = jax.random.split(key, 5)
    params = _make_params(kp, embed_dim, head_dim, lambda_init_cfg, layer_index)

    # Case 1: tile-aligned shapes (no padding path).
    B, Tq, Tk = 2, 8, 8
    x = jax.random.normal(kx1, (B, Tq, embed_dim), jnp.float32)
    encoder_out = jax.random.normal(ke1, (B, Tk, embed_dim), jnp.float32)
    out = jax.block_until_ready(diff_cross_attention(x, encoder_out, params))
    ref = _reference(x, encoder_out, params)
    assert out.shape == (B, Tq, head_dim)
    # bf16 MXU operands -> compare against the f32 reference at a relaxed tolerance.
    assert jnp.allclose(out, ref, atol=2e-2, rtol=2e-2), "mismatch (aligned case)"

    # Case 2: non-aligned Tq / Tk to exercise the padding + kv-mask path.
    B2, Tq2, Tk2 = 2, 12, 20
    x2 = jax.random.normal(kx2, (B2, Tq2, embed_dim), jnp.float32)
    enc2 = jax.random.normal(ke2, (B2, Tk2, embed_dim), jnp.float32)
    out2 = jax.block_until_ready(diff_cross_attention(x2, enc2, params))
    ref2 = _reference(x2, enc2, params)
    assert out2.shape == (B2, Tq2, head_dim)
    assert jnp.allclose(out2, ref2, atol=2e-2, rtol=2e-2), "mismatch (padded case)"

    print("KERNEL_OK")
</pallas_src>

<mosaic_0001>
module attributes {stable_mosaic.version = 11 : i64} {
  func.func @_diff_attn_kernel(%arg0: i32, %arg1: i32, %arg2: i32, %arg3: memref<1x1xf32, #tpu.memory_space<smem>>, %arg4: memref<1x8x8xbf16, #tpu.memory_space<vmem>>, %arg5: memref<1x8x8xbf16, #tpu.memory_space<vmem>>, %arg6: memref<1x8x8xbf16, #tpu.memory_space<vmem>>, %arg7: memref<1x8x8xbf16, #tpu.memory_space<vmem>>, %arg8: memref<1x8x16xbf16, #tpu.memory_space<vmem>>, %arg9: memref<1x8x16xf32, #tpu.memory_space<vmem>>, %arg10: memref<8x1xf32, #tpu.memory_space<vmem>>, %arg11: memref<8x1xf32, #tpu.memory_space<vmem>>, %arg12: memref<8x16xf32, #tpu.memory_space<vmem>>, %arg13: memref<8x1xf32, #tpu.memory_space<vmem>>, %arg14: memref<8x1xf32, #tpu.memory_space<vmem>>, %arg15: memref<8x16xf32, #tpu.memory_space<vmem>>) attributes {dimension_semantics = [#tpu.dimension_semantics<parallel>, #tpu.dimension_semantics<parallel>, #tpu.dimension_semantics<arbitrary>], iteration_bounds = array<i64: 2, 1, 1>, scalar_prefetch = 0 : i64, scratch_operands = 6 : i64, tpu.core_type = #tpu.core_type<tc>, window_params = [{transform_indices = @transform_0, window_bounds = array<i64: 1, 1>}, {transform_indices = @transform_1, window_bounds = array<i64: 1, 8, 8>}, {transform_indices = @transform_2, window_bounds = array<i64: 1, 8, 8>}, {transform_indices = @transform_3, window_bounds = array<i64: 1, 8, 8>}, {transform_indices = @transform_4, window_bounds = array<i64: 1, 8, 8>}, {transform_indices = @transform_5, window_bounds = array<i64: 1, 8, 16>}, {transform_indices = @transform_6, window_bounds = array<i64: 1, 8, 16>}]} {
    %c0_i32 = arith.constant 0 : i32
    %0 = arith.cmpi eq, %arg2, %c0_i32 : i32
    %1 = arith.extui %0 : i1 to i32
    %c0_i32_0 = arith.constant 0 : i32
    %2 = arith.cmpi ne, %1, %c0_i32_0 : i32
    scf.if %2 {
      %cst_48 = arith.constant 0xFF800000 : f32
      %64 = vector.broadcast %cst_48 : f32 to vector<8x1xf32>
      %c0_49 = arith.constant 0 : index
      %c0_50 = arith.constant 0 : index
      %65 = vector.load %arg10[%c0_49, %c0_50] : memref<8x1xf32, #tpu.memory_space<vmem>>, vector<8x1xf32>
      tpu.vector_store %arg10[%c0_49, %c0_50], %64 {strides = array<i32>} : memref<8x1xf32, #tpu.memory_space<vmem>>, vector<8x1xf32>,
      %cst_51 = arith.constant 0xFF800000 : f32
      %66 = vector.broadcast %cst_51 : f32 to vector<8x1xf32>
      %c0_52 = arith.constant 0 : index
      %c0_53 = arith.constant 0 : index
      %67 = vector.load %arg13[%c0_52, %c0_53] : memref<8x1xf32, #tpu.memory_space<vmem>>, vector<8x1xf32>
      tpu.vector_store %arg13[%c0_52, %c0_53], %66 {strides = array<i32>} : memref<8x1xf32, #tpu.memory_space<vmem>>, vector<8x1xf32>,
      %cst_54 = arith.constant 0.000000e+00 : f32
      %68 = vector.broadcast %cst_54 : f32 to vector<8x1xf32>
      %c0_55 = arith.constant 0 : index
      %c0_56 = arith.constant 0 : index
      %69 = vector.load %arg11[%c0_55, %c0_56] : memref<8x1xf32, #tpu.memory_space<vmem>>, vector<8x1xf32>
      tpu.vector_store %arg11[%c0_55, %c0_56], %68 {strides = array<i32>} : memref<8x1xf32, #tpu.memory_space<vmem>>, vector<8x1xf32>,
      %cst_57 = arith.constant 0.000000e+00 : f32
      %70 = vector.broadcast %cst_57 : f32 to vector<8x1xf32>
      %c0_58 = arith.constant 0 : index
      %c0_59 = arith.constant 0 : index
      %71 = vector.load %arg14[%c0_58, %c0_59] : memref<8x1xf32, #tpu.memory_space<vmem>>, vector<8x1xf32>
      tpu.vector_store %arg14[%c0_58, %c0_59], %70 {strides = array<i32>} : memref<8x1xf32, #tpu.memory_space<vmem>>, vector<8x1xf32>,
      %cst_60 = arith.constant 0.000000e+00 : f32
      %72 = vector.broadcast %cst_60 : f32 to vector<8x16xf32>
      %c0_61 = arith.constant 0 : index
      %c0_62 = arith.constant 0 : index
      %73 = vector.load %arg12[%c0_61, %c0_62] : memref<8x16xf32, #tpu.memory_space<vmem>>, vector<8x16xf32>
      tpu.vector_store %arg12[%c0_61, %c0_62], %72 {strides = array<i32>} : memref<8x16xf32, #tpu.memory_space<vmem>>, vector<8x16xf32>,
      %cst_63 = arith.constant 0.000000e+00 : f32
      %74 = vector.broadcast %cst_63 : f32 to vector<8x16xf32>
      %c0_64 = arith.constant 0 : index
      %c0_65 = arith.constant 0 : index
      %75 = vector.load %arg15[%c0_64, %c0_65] : memref<8x16xf32, #tpu.memory_space<vmem>>, vector<8x16xf32>
      tpu.vector_store %arg15[%c0_64, %c0_65], %74 {strides = array<i32>} : memref<8x16xf32, #tpu.memory_space<vmem>>, vector<8x16xf32>,
    } else {
    }
    %c0 = arith.constant 0 : index
    %c0_1 = arith.constant 0 : index
    %c0_2 = arith.constant 0 : index
    %3 = vector.load %arg4[%c0, %c0_1, %c0_2] : memref<1x8x8xbf16, #tpu.memory_space<vmem>>, vector<1x8x8xbf16>
    %4 = vector.shape_cast %3 : vector<1x8x8xbf16> to vector<8x8xbf16>
    %c0_3 = arith.constant 0 : index
    %c0_4 = arith.constant 0 : index
    %c0_5 = arith.constant 0 : index
    %5 = vector.load %arg5[%c0_3, %c0_4, %c0_5] : memref<1x8x8xbf16, #tpu.memory_space<vmem>>, vector<1x8x8xbf16>
    %6 = vector.shape_cast %5 : vector<1x8x8xbf16> to vector<8x8xbf16>
    %c0_6 = arith.constant 0 : index
    %c0_7 = arith.constant 0 : index
    %c0_8 = arith.constant 0 : index
    %7 = vector.load %arg6[%c0_6, %c0_7, %c0_8] : memref<1x8x8xbf16, #tpu.memory_space<vmem>>, vector<1x8x8xbf16>
    %8 = vector.shape_cast %7 : vector<1x8x8xbf16> to vector<8x8xbf16>
    %c0_9 = arith.constant 0 : index
    %c0_10 = arith.constant 0 : index
    %c0_11 = arith.constant 0 : index
    %9 = vector.load %arg7[%c0_9, %c0_10, %c0_11] : memref<1x8x8xbf16, #tpu.memory_space<vmem>>, vector<1x8x8xbf16>
    %10 = vector.shape_cast %9 : vector<1x8x8xbf16> to vector<8x8xbf16>
    %c0_12 = arith.constant 0 : index
    %c0_13 = arith.constant 0 : index
    %c0_14 = arith.constant 0 : index
    %11 = vector.load %arg8[%c0_12, %c0_13, %c0_14] : memref<1x8x16xbf16, #tpu.memory_space<vmem>>, vector<1x8x16xbf16>
    %12 = vector.shape_cast %11 : vector<1x8x16xbf16> to vector<8x16xbf16>
    %cst = arith.constant dense<0.000000e+00> : vector<8x8xf32>
    %13 = tpu.matmul %4, %8, %cst {dimension_numbers = #tpu.dot_dimension_numbers<[1], [1], [0], [0], [0, 0, 1, 0], [], []>} : vector<8x8xbf16>, vector<8x8xbf16>, vector<8x8xf32> -> vector<8x8xf32>
    %cst_15 = arith.constant dense<0.000000e+00> : vector<8x8xf32>
    %14 = tpu.matmul %6, %10, %cst_15 {dimension_numbers = #tpu.dot_dimension_numbers<[1], [1], [0], [0], [0, 0, 1, 0], [], []>} : vector<8x8xbf16>, vector<8x8xbf16>, vector<8x8xf32> -> vector<8x8xf32>
    %c0_16 = arith.constant 0 : index
    %c0_17 = arith.constant 0 : index
    %15 = vector.load %arg10[%c0_16, %c0_17] : memref<8x1xf32, #tpu.memory_space<vmem>>, vector<8x1xf32>
    %cst_18 = arith.constant dense<0xFF800000> : vector<8xf32>
    %16 = vector.multi_reduction <maximumf>, %13, %cst_18 [1] : vector<8x8xf32> to vector<8xf32>
    %17 = vector.shape_cast %16 : vector<8xf32> to vector<8x1xf32>
    %18 = arith.maximumf %15, %17 : vector<8x1xf32>
    %19 = arith.subf %15, %18 : vector<8x1xf32>
    %20 = math.exp %19 : vector<8x1xf32>
    %21 = vector.broadcast %18 : vector<8x1xf32> to vector<8x8xf32>
    %22 = arith.subf %13, %21 : vector<8x8xf32>
    %23 = math.exp %22 : vector<8x8xf32>
    %c0_19 = arith.constant 0 : index
    %c0_20 = arith.constant 0 : index
    %24 = vector.load %arg11[%c0_19, %c0_20] : memref<8x1xf32, #tpu.memory_space<vmem>>, vector<8x1xf32>
    %25 = arith.mulf %20, %24 : vector<8x1xf32>
    %cst_21 = arith.constant dense<0.000000e+00> : vector<8xf32>
    %26 = vector.multi_reduction <add>, %23, %cst_21 [1] : vector<8x8xf32> to vector<8xf32>
    %27 = vector.shape_cast %26 : vector<8xf32> to vector<8x1xf32>
    %28 = arith.addf %25, %27 : vector<8x1xf32>
    %c0_22 = arith.constant 0 : index
    %c0_23 = arith.constant 0 : index
    %29 = vector.load %arg11[%c0_22, %c0_23] : memref<8x1xf32, #tpu.memory_space<vmem>>, vector<8x1xf32>
    tpu.vector_store %arg11[%c0_22, %c0_23], %28 {strides = array<i32>} : memref<8x1xf32, #tpu.memory_space<vmem>>, vector<8x1xf32>,
    %c0_24 = arith.constant 0 : index
    %c0_25 = arith.constant 0 : index
    %30 = vector.load %arg12[%c0_24, %c0_25] : memref<8x16xf32, #tpu.memory_space<vmem>>, vector<8x16xf32>
    %31 = vector.broadcast %20 : vector<8x1xf32> to vector<8x16xf32>
    %32 = arith.mulf %31, %30 : vector<8x16xf32>
    %33 = arith.truncf %23 : vector<8x8xf32> to vector<8x8xbf16>
    %cst_26 = arith.constant dense<0.000000e+00> : vector<8x16xf32>
    %34 = tpu.matmul %33, %12, %cst_26 {dimension_numbers = #tpu.dot_dimension_numbers<[1], [0], [0], [1], [0, 0, 1, 1], [], []>} : vector<8x8xbf16>, vector<8x16xbf16>, vector<8x16xf32> -> vector<8x16xf32>
    %35 = arith.addf %32, %34 : vector<8x16xf32>
    %c0_27 = arith.constant 0 : index
    %c0_28 = arith.constant 0 : index
    %36 = vector.load %arg12[%c0_27, %c0_28] : memref<8x16xf32, #tpu.memory_space<vmem>>, vector<8x16xf32>
    tpu.vector_store %arg12[%c0_27, %c0_28], %35 {strides = array<i32>} : memref<8x16xf32, #tpu.memory_space<vmem>>, vector<8x16xf32>,
    %c0_29 = arith.constant 0 : index
    %c0_30 = arith.constant 0 : index
    %37 = vector.load %arg10[%c0_29, %c0_30] : memref<8x1xf32, #tpu.memory_space<vmem>>, vector<8x1xf32>
    tpu.vector_store %arg10[%c0_29, %c0_30], %18 {strides = array<i32>} : memref<8x1xf32, #tpu.memory_space<vmem>>, vector<8x1xf32>,
    %c0_31 = arith.constant 0 : index
    %c0_32 = arith.constant 0 : index
    %38 = vector.load %arg13[%c0_31, %c0_32] : memref<8x1xf32, #tpu.memory_space<vmem>>, vector<8x1xf32>
    %cst_33 = arith.constant dense<0xFF800000> : vector<8xf32>
    %39 = vector.multi_reduction <maximumf>, %14, %cst_33 [1] : vector<8x8xf32> to vector<8xf32>
    %40 = vector.shape_cast %39 : vector<8xf32> to vector<8x1xf32>
    %41 = arith.maximumf %38, %40 : vector<8x1xf32>
    %42 = arith.subf %38, %41 : vector<8x1xf32>
    %43 = math.exp %42 : vector<8x1xf32>
    %44 = vector.broadcast %41 : vector<8x1xf32> to vector<8x8xf32>
    %45 = arith.subf %14, %44 : vector<8x8xf32>
    %46 = math.exp %45 : vector<8x8xf32>
    %c0_34 = arith.constant 0 : index
    %c0_35 = arith.constant 0 : index
    %47 = vector.load %arg14[%c0_34, %c0_35] : memref<8x1xf32, #tpu.memory_space<vmem>>, vector<8x1xf32>
    %48 = arith.mulf %43, %47 : vector<8x1xf32>
    %cst_36 = arith.constant dense<0.000000e+00> : vector<8xf32>
    %49 = vector.multi_reduction <add>, %46, %cst_36 [1] : vector<8x8xf32> to vector<8xf32>
    %50 = vector.shape_cast %49 : vector<8xf32> to vector<8x1xf32>
    %51 = arith.addf %48, %50 : vector<8x1xf32>
    %c0_37 = arith.constant 0 : index
    %c0_38 = arith.constant 0 : index
    %52 = vector.load %arg14[%c0_37, %c0_38] : memref<8x1xf32, #tpu.memory_space<vmem>>, vector<8x1xf32>
    tpu.vector_store %arg14[%c0_37, %c0_38], %51 {strides = array<i32>} : memref<8x1xf32, #tpu.memory_space<vmem>>, vector<8x1xf32>,
    %c0_39 = arith.constant 0 : index
    %c0_40 = arith.constant 0 : index
    %53 = vector.load %arg15[%c0_39, %c0_40] : memref<8x16xf32, #tpu.memory_space<vmem>>, vector<8x16xf32>
    %54 = vector.broadcast %43 : vector<8x1xf32> to vector<8x16xf32>
    %55 = arith.mulf %54, %53 : vector<8x16xf32>
    %56 = arith.truncf %46 : vector<8x8xf32> to vector<8x8xbf16>
    %cst_41 = arith.constant dense<0.000000e+00> : vector<8x16xf32>
    %57 = tpu.matmul %56, %12, %cst_41 {dimension_numbers = #tpu.dot_dimension_numbers<[1], [0], [0], [1], [0, 0, 1, 1], [], []>} : vector<8x8xbf16>, vector<8x16xbf16>, vector<8x16xf32> -> vector<8x16xf32>
    %58 = arith.addf %55, %57 : vector<8x16xf32>
    %c0_42 = arith.constant 0 : index
    %c0_43 = arith.constant 0 : index
    %59 = vector.load %arg15[%c0_42, %c0_43] : memref<8x16xf32, #tpu.memory_space<vmem>>, vector<8x16xf32>
    tpu.vector_store %arg15[%c0_42, %c0_43], %58 {strides = array<i32>} : memref<8x16xf32, #tpu.memory_space<vmem>>, vector<8x16xf32>,
    %c0_44 = arith.constant 0 : index
    %c0_45 = arith.constant 0 : index
    %60 = vector.load %arg13[%c0_44, %c0_45] : memref<8x1xf32, #tpu.memory_space<vmem>>, vector<8x1xf32>
    tpu.vector_store %arg13[%c0_44, %c0_45], %41 {strides = array<i32>} : memref<8x1xf32, #tpu.memory_space<vmem>>, vector<8x1xf32>,
    %c0_i32_46 = arith.constant 0 : i32
    %61 = arith.cmpi eq, %arg2, %c0_i32_46 : i32
    %62 = arith.extui %61 : i1 to i32
    %c0_i32_47 = arith.constant 0 : i32
    %63 = arith.cmpi ne, %62, %c0_i32_47 : i32
    scf.if %63 {
      %c0_48 = arith.constant 0 : index
      %c0_49 = arith.constant 0 : index
      %64 = memref.load %arg3[%c0_48, %c0_49] : memref<1x1xf32, #tpu.memory_space<smem>>
      %c0_50 = arith.constant 0 : index
      %c0_51 = arith.constant 0 : index
      %65 = vector.load %arg11[%c0_50, %c0_51] : memref<8x1xf32, #tpu.memory_space<vmem>>, vector<8x1xf32>
      %cst_52 = arith.constant 1.000000e+00 : f32
      %66 = vector.broadcast %cst_52 : f32 to vector<8x1xf32>
      %67 = arith.divf %66, %65 : vector<8x1xf32>
      %c0_53 = arith.constant 0 : index
      %c0_54 = arith.constant 0 : index
      %68 = vector.load %arg14[%c0_53, %c0_54] : memref<8x1xf32, #tpu.memory_space<vmem>>, vector<8x1xf32>
      %69 = vector.broadcast %64 : f32 to vector<8x1xf32>
      %70 = arith.divf %69, %68 : vector<8x1xf32>
      %c0_55 = arith.constant 0 : index
      %c0_56 = arith.constant 0 : index
      %71 = vector.load %arg12[%c0_55, %c0_56] : memref<8x16xf32, #tpu.memory_space<vmem>>, vector<8x16xf32>
      %72 = vector.broadcast %67 : vector<8x1xf32> to vector<8x16xf32>
      %73 = arith.mulf %71, %72 : vector<8x16xf32>
      %c0_57 = arith.constant 0 : index
      %c0_58 = arith.constant 0 : index
      %74 = vector.load %arg15[%c0_57, %c0_58] : memref<8x16xf32, #tpu.memory_space<vmem>>, vector<8x16xf32>
      %75 = vector.broadcast %70 : vector<8x1xf32> to vector<8x16xf32>
      %76 = arith.mulf %74, %75 : vector<8x16xf32>
      %77 = arith.subf %73, %76 : vector<8x16xf32>
      %c0_59 = arith.constant 0 : index
      %c0_60 = arith.constant 0 : index
      %c0_61 = arith.constant 0 : index
      %78 = vector.load %arg9[%c0_59, %c0_60, %c0_61] : memref<1x8x16xf32, #tpu.memory_space<vmem>>, vector<1x8x16xf32>
      %79 = vector.shape_cast %78 : vector<1x8x16xf32> to vector<8x16xf32>
      %80 = vector.shape_cast %77 : vector<8x16xf32> to vector<1x8x16xf32>
      tpu.vector_store %arg9[%c0_59, %c0_60, %c0_61], %80 {strides = array<i32>} : memref<1x8x16xf32, #tpu.memory_space<vmem>>, vector<1x8x16xf32>,
    } else {
    }
    return
  }
  func.func @transform_0(%arg0: i32, %arg1: i32, %arg2: i32) -> (i32, i32) {
    %c0_i32 = arith.constant 0 : i32
    %c0_i32_0 = arith.constant 0 : i32
    %c0_i32_1 = arith.constant 0 : i32
    return %c0_i32, %c0_i32_0 : i32, i32
  }
  func.func @transform_1(%arg0: i32, %arg1: i32, %arg2: i32) -> (i32, i32, i32) {
    %c0_i32 = arith.constant 0 : i32
    %c0_i32_0 = arith.constant 0 : i32
    return %arg0, %arg1, %c0_i32 : i32, i32, i32
  }
  func.func @transform_2(%arg0: i32, %arg1: i32, %arg2: i32) -> (i32, i32, i32) {
    %c0_i32 = arith.constant 0 : i32
    %c0_i32_0 = arith.constant 0 : i32
    return %arg0, %arg1, %c0_i32 : i32, i32, i32
  }
  func.func @transform_3(%arg0: i32, %arg1: i32, %arg2: i32) -> (i32, i32, i32) {
    %c0_i32 = arith.constant 0 : i32
    %c0_i32_0 = arith.constant 0 : i32
    return %arg0, %arg2, %c0_i32 : i32, i32, i32
  }
  func.func @transform_4(%arg0: i32, %arg1: i32, %arg2: i32) -> (i32, i32, i32) {
    %c0_i32 = arith.constant 0 : i32
    %c0_i32_0 = arith.constant 0 : i32
    return %arg0, %arg2, %c0_i32 : i32, i32, i32
  }
  func.func @transform_5(%arg0: i32, %arg1: i32, %arg2: i32) -> (i32, i32, i32) {
    %c0_i32 = arith.constant 0 : i32
    %c0_i32_0 = arith.constant 0 : i32
    return %arg0, %arg2, %c0_i32 : i32, i32, i32
  }
  func.func @transform_6(%arg0: i32, %arg1: i32, %arg2: i32) -> (i32, i32, i32) {
    %c0_i32 = arith.constant 0 : i32
    %c0_i32_0 = arith.constant 0 : i32
    return %arg0, %arg1, %c0_i32 : i32, i32, i32
  }
}

</mosaic_0001>

<bundles_post_ra>
// kernel: tpu_custom_call.1
= control target key start
LH: loop header
LB: loop body
LE: loop exit
PB: predicated region body
PF: predicated region fallthrough
CT: control target
= control target key end

     0   :  { %s1579_s0 = inlined_call_operand.<no memory space> [shape: f32[1,1], index: 0, kind: input, shape index: {}]   ;;  %s1580_s1 = inlined_call_operand.hbm [shape: bf16[2,8,8], index: 1, kind: input, shape index: {}]   ;;  %s1581_s2 = inlined_call_operand.hbm [shape: bf16[2,8,8], index: 2, kind: input, shape index: {}]   ;;  %s1582_s3 = inlined_call_operand.hbm [shape: bf16[2,8,8], index: 3, kind: input, shape index: {}]   ;;  %s1583_s4 = inlined_call_operand.hbm [shape: bf16[2,8,8], index: 4, kind: input, shape index: {}]   ;;  %s1584_s5 = inlined_call_operand.vmem [shape: bf16[2,8,16], index: 5, kind: input, shape index: {}]   ;;  %s1585_s6 = inlined_call_operand.hbm [shape: f32[2,8,16], index: 6, kind: output, shape index: {}]  }
   0x1   :  { %1591 = sst [smem:[#allocation27_spill]] %s1581_s2 }
   0x2   :  { %11 = sst [smem:[#allocation8]] %s1579_s0 }
   0x3   :  { %12 = vsyncpa [#allocation10], 0 }
   0x4   :  { %14 = vsyncpa [#allocation10 + $0x1], 0 }
   0x5   :  { %15 = vsyncpa [#allocation13], 0 }
   0x6   :  { %17 = vsyncpa [#allocation13 + $0x1], 0 }
   0x7   :  { %18 = vsyncpa [#allocation16], 0 }
   0x8   :  { %20 = vsyncpa [#allocation16 + $0x1], 0 }
   0x9   :  { %21 = vsyncpa [#allocation11], 0 }
   0xa   :  { %23 = vsyncpa [#allocation11 + $0x1], 0  ;;  %s1320_s23 = smov 0   ;;  %s1322_s24 = smov 0  }
   0xb   :  { %s1324_s25 = smov 0   ;;  %s1326_s26 = smov 0  }
   0xc   :  { %s1328_s27 = smov 0   ;;  %s1330_s28 = smov 0  }
   0xd LB: > { %1592 = sst [smem:[#allocation22_spill]] %s1259_s25  ;;  %s1351_s0 = sadd.s32 4294967295, %s1271_s28   ;;  %s1271_s28 = sphi %s1330_s28, %s29_s28   ;;  %s1267_s27 = sphi %s1328_s27, %s1609_s27   ;;  %s1263_s26 = sphi %s1326_s26, %s1608_s26   ;;  %s1259_s25 = sphi %s1324_s25, %s1607_s25   ;;  %s1255_s24 = sphi %s1322_s24, %s1611_s24   ;;  %s1251_s23 = sphi %s1320_s23, %s1610_s23  }
   0xe   : > { %1593 = sst [smem:[#allocation23_spill]] %s1267_s27  ;;  %s918_s29 = sadd.s32 4294967294, %s1271_s28  }
   0xf   : > { %1594 = sst [smem:[#allocation24_spill]] %s1271_s28  ;;  %s48_s30 = sadd.s32 1, %s1267_s27 }
  0x10   : > { %s78_s7 = sadd.s32 1, %s1259_s25  ;;  %p50_p0 = scmp.ge.s32.totalorder %s48_s30, 2 }
  0x11   : > { %p85_p1 = scmp.ne.s32.totalorder %s1259_s25, %s1255_s24  ;;  %p86_p2 = scmp.eq.s32.totalorder %s1271_s28, 0 }
  0x12   : > { %p91_p3 = scmp.ne.s32.totalorder %s1255_s24, %s1251_s23  ;;  %s1613_s30 = smov (%p50_p0, %s48_s30), 0 }
  0x13   : > { %1595 = sst [smem:[#allocation25_spill]] %s1613_s30  ;;  %p1363_p4 = por %p86_p2, %p85_p1 }
  0x14   : > { %p92_p5 = scmp.eq.s32.totalorder %s1351_s0, 0  ;;  %s73_s9 = ssub.s32 %s1267_s27, %s1613_s30 }
  0x15   : > { %p229_p6 = scmp.eq.s32.totalorder %s1351_s0, 1  ;;  %p76_p7 = scmp.eq.s32.totalorder %s73_s9, 0 }
  0x16   : > { %p1371_p8 = por %p92_p5, %p91_p3  ;;  %p235_p10 = scmp.eq.s32.totalorder %s918_s29, 1 }
  0x17   : > { %p1375_p9 = por %p229_p6, %p85_p1  ;;  %p1003_p13 = scmp.lt.s32.totalorder %s1271_s28, 2 }
  0x18   : > { %s1380_s12 = scalar_select %p76_p7, %s1259_s25, %s78_s7  }
  0x19   : > { %p1382_p11 = por %p235_p10, %p91_p3  ;;  %s1389_s14 = sand.u32 1, %s1259_s25  }
  0x1a   : > { %1599 = sst [smem:[#allocation26_spill]] %s1380_s12  ;;  %s1392_s15 = sshll.u32 %s1389_s14, 2 }
  0x1b   : > { %s1395_s16 = sshll.u32 %s1267_s27, 6  ;;  %p1399_p0 = pnand %p1003_p13, %p1363_p4 }
  0x1c   : > { %s277_s18 = sand.u32 1, %s1271_s28   ;;  %s1602_s2 = sld [smem:[#allocation27_spill]] }
  0x1d   : > { %s281_s22 = scalar_lea.vmem [#allocation12], %s1392_s15  ;;  %p929_p1 = scmp.ge.s32.totalorder %s1271_s28, 1 }
  0x1e   : > { %s289_s29 = sshll.u32 %s281_s22, 4  ;;  %p342_p2 = scmp.lt.s32.totalorder %s1271_s28, 3  ;;  %s290_s29 = int_to_ptr.vmem [resolvable:$true] %s289_s29 }
  0x1f   : > { %s1411_s7 = scalar_lea.sflag [#allocation13], %s277_s18  ;;  %p1073_p3 = pneg %p1399_p0 }
  0x20   : > { %s1084_s8 = scalar_lea.vmem %s290_s29, 64  ;;  %s1273_s9 = smov [#allocation12]  }
  0x21   : > { %p1085_p4 = scmp.ne.s32.totalorder %s290_s29, %s1084_s8  ;;  %s1089_s30 = sshll.u32 %s1273_s9, 4  ;;  %s1090_s30 = int_to_ptr.vmem [resolvable:$false] %s1089_s30 }
  0x22   : > { %s287_s21 = scalar_lea.hbm %s1602_s2, %s1395_s16  ;;  %s1091_s19 = scalar_lea.vmem %s1090_s30, 128 }
  0x23   : > { %p1087_p5 = pnand %p1085_p4, %p1073_p3  ;;  %p1092_p7 = scmp.lt.s32.totalorder %s290_s29, %s1090_s30 }
  0x24   : > { %p1093_p10 = scmp.lt.s32.totalorder %s1091_s19, %s1084_s8 }
  0x25   : > { %p1088_p6 = pneg %p1087_p5 }
  0x26   : > { %p1094_p13 = por %p1093_p10, %p1092_p7 }
  0x28   : > { %p1095_p12 = pnand %p1094_p13, %p1088_p6 }
  0x2a   : > { %1098 = shalt.err (!%p1095_p12)
}
  0x2b   : > { %992 = dma.hbm_to_vmem [thread:$0]  (!%p1399_p0), %s287_s21, 64, %s290_s29, %s1411_s7  }
  0x2c   : > { %p1425_p4 = pnand %p929_p1, %p342_p2  ;;  %s268_s22 = scalar_lea.hbm %s1580_s1, %s1395_s16 }
  0x2d   : > { %s262_s8 = scalar_lea.vmem [#allocation9], %s1392_s15  ;;  %s306_s27 = scalar_lea.hbm %s1582_s3, %s1395_s16 }
  0x2e   : > { %s270_s9 = sshll.u32 %s262_s8, 4  ;;  %s259_s12 = scalar_lea.sflag [#allocation10], %s1389_s14  ;;  %s271_s9 = int_to_ptr.vmem [resolvable:$true] %s270_s9 }
  0x2f   : > { %s1112_s25 = scalar_lea.vmem %s271_s9, 64  ;;  %s1274_s21 = smov [#allocation9]  }
  0x30   : > { %p1113_p12 = scmp.ne.s32.totalorder %s271_s9, %s1112_s25  ;;  %s1117_s29 = sshll.u32 %s1274_s21, 4  ;;  %s1118_s29 = int_to_ptr.vmem [resolvable:$false] %s1117_s29 }
  0x31   : > { %s1119_s28 = scalar_lea.vmem %s1118_s29, 128  ;;  %p1120_p5 = scmp.lt.s32.totalorder %s271_s9, %s1118_s29 }
  0x32   : > { %p1115_p1 = pnand %p1113_p12, %p1073_p3  ;;  %p1121_p6 = scmp.lt.s32.totalorder %s1119_s28, %s1112_s25 }
  0x34   : > { %p1116_p2 = pneg %p1115_p1  ;;  %p1122_p7 = por %p1121_p6, %p1120_p5 }
  0x36   : > { %p1123_p10 = pnand %p1122_p7, %p1116_p2 }
  0x38   : > { %1126 = shalt.err (!%p1123_p10)
}
  0x39   : > { %989 = dma.hbm_to_vmem [thread:$0]  (!%p1399_p0), %s268_s22, 64, %s271_s9, %s259_s12  }
  0x3a   : > { %s300_s2 = scalar_lea.vmem [#allocation14], %s1392_s15  ;;  %s1275_s8 = smov [#allocation14]  }
  0x3b   : > { %s308_s30 = sshll.u32 %s300_s2, 4  ;;  %s1145_s19 = sshll.u32 %s1275_s8, 4  ;;  %s309_s30 = int_to_ptr.vmem [resolvable:$true] %s308_s30  ;;  %s1146_s19 = int_to_ptr.vmem [resolvable:$false] %s1145_s19 }
  0x3c   : > { %s1140_s20 = scalar_lea.vmem %s309_s30, 64  ;;  %s1147_s25 = scalar_lea.vmem %s1146_s19, 128 }
  0x3d   : > { %p1141_p13 = scmp.ne.s32.totalorder %s309_s30, %s1140_s20  ;;  %p1148_p2 = scmp.lt.s32.totalorder %s309_s30, %s1146_s19 }
  0x3e   : > { %p1149_p5 = scmp.lt.s32.totalorder %s1147_s25, %s1140_s20 }
  0x3f   : > { %p1143_p12 = pnand %p1141_p13, %p1073_p3 }
  0x40   : > { %p1150_p6 = por %p1149_p5, %p1148_p2 }
  0x41   : > { %p1144_p1 = pneg %p1143_p12 }
  0x43   : > { %p1151_p7 = pnand %p1150_p6, %p1144_p1 }
  0x45   : > { %1154 = shalt.err (!%p1151_p7)
}
  0x46   : > { %995 = dma.hbm_to_vmem [thread:$0]  (!%p1399_p0), %s306_s27, 64, %s309_s30, %s1411_s7  }
  0x47   : > { %s325_s21 = scalar_lea.hbm %s1583_s4, %s1395_s16  ;;  %s319_s29 = scalar_lea.vmem [#allocation15], %s1392_s15 }
  0x48   : > { %s327_s2 = sshll.u32 %s319_s29, 4  ;;  %s316_s20 = scalar_lea.sflag [#allocation16], %s1389_s14  ;;  %s328_s2 = int_to_ptr.vmem [resolvable:$true] %s327_s2 }
  0x49   : > { %s1168_s8 = scalar_lea.vmem %s328_s2, 64  ;;  %s1276_s19 = smov [#allocation15]  }
  0x4a   : > { %p1169_p10 = scmp.ne.s32.totalorder %s328_s2, %s1168_s8  ;;  %s1173_s25 = sshll.u32 %s1276_s19, 4  ;;  %s1174_s25 = int_to_ptr.vmem [resolvable:$false] %s1173_s25 }
  0x4b   : > { %s1175_s28 = scalar_lea.vmem %s1174_s25, 128  ;;  %p1176_p1 = scmp.lt.s32.totalorder %s328_s2, %s1174_s25 }
  0x4c   : > { %p1171_p13 = pnand %p1169_p10, %p1073_p3  ;;  %p1177_p2 = scmp.lt.s32.totalorder %s1175_s28, %s1168_s8 }
  0x4e   : > { %p1172_p12 = pneg %p1171_p13  ;;  %p1178_p5 = por %p1177_p2, %p1176_p1 }
  0x50   : > { %p1179_p6 = pnand %p1178_p5, %p1172_p12 }
  0x52   : > { %1182 = shalt.err (!%p1179_p6)
}
  0x53   : > { %998 = dma.hbm_to_vmem [thread:$0]  (!%p1399_p0), %s325_s21, 64, %s328_s2, %s316_s20  }
  0x54   : > { %346 = sbr.rel (%p1425_p4) target bundleno = 892 (0x37c), region = 44  ;;  %s1470_s27 = sand.u32 (!%p1425_p4), 1, %s1255_s24  }
  0x55   : > { %s1473_s14 = sshll.u32 (!%p1425_p4), %s1470_s27, 2  ;;  %s349_s15 = scalar_lea.sflag (!%p1425_p4), [#allocation10], %s1470_s27 }
  0x56   : > { %s352_s16 = scalar_lea.vmem (!%p1425_p4), [#allocation9], %s1473_s14 }
  0x59   : > { %1234 = dma.done.wait (%p1371_p8), %s349_s15, 64  }
  0x5a   : > { %1236 = vsyncadd (%p1371_p8), %s349_s15, 4294967232  ;;  %s357_s17 = sand.u32 1, %s1351_s0   ;;  %s361_s18 = scalar_lea.vmem [#allocation12], %s1473_s14 }
  0x5b   : > { %s358_s7 = scalar_lea.sflag [#allocation13], %s357_s17 }
  0x5c   : > { %1238 = dma.done.wait (%p1371_p8), %s358_s7, 128  }
  0x5d   : > { %1240 = vsyncadd (%p1371_p8), %s358_s7, 4294967168  ;;  %s370_s30 = scalar_lea.vmem [#allocation14], %s1473_s14  ;;  %s376_s12 = scalar_lea.sflag [#allocation16], %s1470_s27 }
  0x5e   : > { %s379_s22 = scalar_lea.vmem [#allocation15], %s1473_s14 }
  0x5f   : > { %1242 = dma.done.wait (%p1371_p8), %s376_s12, 64  }
  0x60   : > { %1244 = vsyncadd (%p1371_p8), %s376_s12, 4294967232  ;;  %v1277_v0 = vmov 0.0   ;;  %vm1278_vm0 = vmmov 0   ;;  %vm455_vm1 = vcmask 64512   ;;  %v452_v1 = vld [vmem:[%s370_s30] sm:$0xf] }
  0x61   : > { %952 = vmatprep.subr.bf16.mxu0 %v1277_v0  ;;  %958 = vmatprep.subr.bf16.mxu1 %v1277_v0  ;;  %v453_v2 = vld [vmem:[%s379_s22] sm:$0xf]  ;;  %v460_v3 = vsel %vm455_vm1, %v452_v1, 0  ;;  %v450_v5 = vld [vmem:[%s352_s16] sm:$0xf]  ;;  %vm442_vm2 = vcmask 7168  }
  0x62   : > { %954 = vmatprep.mubr.msk.bf16.mxu0 %vm1278_vm0, %v1277_v0  ;;  %960 = vmatprep.mubr.msk.bf16.mxu1 %vm1278_vm0, %v1277_v0  ;;  %v506_v4 = vsel %vm455_vm1, %v453_v2, 0  ;;  %v451_v6 = vld [vmem:[%s361_s18] sm:$0xf]  ;;  %v1279_v7 = vmov -inf   ;;  %445 = vst.msk [vmem:[#allocation3] sm:$0xff] %vm442_vm2, %v1277_v0  ;;  %446 = vst.msk [vmem:[#allocation6] sm:$0xff] %vm442_vm2, %v1277_v0 }
  0x63   : > { %953 = vmatpush3.bf16.xpose.msra.mxu0 %v460_v3  ;;  %959 = vmatpush3.bf16.xpose.msra.mxu1 %v506_v4  ;;  %443 = vst.msk [vmem:[#allocation2] sm:$0xff] %vm442_vm2, %v1279_v7  ;;  %444 = vst.msk [vmem:[#allocation5] sm:$0xff] %vm442_vm2, %v1279_v7  ;;  %v1280_v18 = vmov 0   ;;  %p430_p8 = scmp.lt.s32.totalorder %s1263_s26, 1  ;;  %vm583_vm3 = vcmask 1043456   ;;  %vm447_vm4 = vcmask 130048  }
  0x64   : > { %964 = vmatprep.subr.bf16.mxu0 %v1277_v0  ;;  %970 = vmatprep.subr.bf16.mxu1 %v1277_v0  ;;  %449 = vst.msk [vmem:[#allocation7] sm:$0xff] %vm447_vm4, %v1277_v0  ;;  %448 = vst.msk [vmem:[#allocation4] sm:$0xff] %vm447_vm4, %v1277_v0  ;;  %s711_s2 = sld [smem:[#allocation8]]  ;;  %s934_s20 = sshll.u32 %s1470_s27, 3 }
  0x65   : > { %1057 = vset.pattern.permute.xlu1 %v1280_v18  ;;  %1058 = vset.pattern.permute.xlu0 %v1280_v18  ;;  %s431_s0 = scalar_select %p430_p8, %s1263_s26, 1 }
  0x66   : > { %s941_s8 = sshll.u32 %s1263_s26, 7  ;;  %s429_s19 = scalar_lea.vmem [#allocation17], %s934_s20 }
  0x67   : > { %s935_s10 = sshll.u32 %s431_s0, 2  ;;  %s750_s25 = sshll.u32 %s429_s19, 4  ;;  %s751_s25 = int_to_ptr.vmem [resolvable:$true] %s750_s25 }
  0x68   : > { %s436_s29 = scalar_lea.vmem %s1584_s5, %s935_s10  ;;  %s748_s15 = scalar_lea.hbm %s1585_s6, %s941_s8 }
  0x69   : > { %v454_v27 = vld [vmem:[%s436_s29] sm:$0xf]  ;;  %v564_v45 = vld [vmem:[#allocation3] sm:$0xff]  ;;  %s736_s16 = scalar_lea.sflag [#allocation11], %s1470_s27  ;;  %s1183_s17 = scalar_lea.vmem %s751_s25, 128 }
  0x6a   : > { %955 = vmatmul.mubr.msk.bf16.vlgmr.msra.gmra.mxu0 %vm455_vm1, %v450_v5  ;;  %961 = vmatmul.mubr.msk.bf16.vlgmr.msra.gmra.mxu1 %vm455_vm1, %v451_v6  ;;  %v548_v19 = vld [vmem:[#allocation2] sm:$0xff]  ;;  %v631_v22 = vld [vmem:[#allocation5] sm:$0xff]  ;;  %v585_v28 = vsel %vm583_vm3, %v454_v27, 0  ;;  %v716_v56 = vstv %s711_s2  ;;  %p1184_p0 = scmp.ne.s32.totalorder %s751_s25, %s1183_s17  ;;  %s1281_s7 = smov [#allocation17]  }
  0x6b   : > { %966 = vmatprep.mubr.msk.bf16.mxu0 %vm1278_vm0, %v1277_v0  ;;  %972 = vmatprep.mubr.msk.bf16.mxu1 %vm1278_vm0, %v1277_v0  ;;  %v647_v48 = vld [vmem:[#allocation6] sm:$0xff]  ;;  %v572_v59 = vld [vmem:[#allocation4] sm:$0xff]  ;;  %v654_v62 = vld [vmem:[#allocation7] sm:$0xff]  ;;  %s1187_s26 = sshll.u32 %s1281_s7, 4  ;;  %s1188_s26 = int_to_ptr.vmem [resolvable:$false] %s1187_s26 }
  0x6c   : > { %965 = vmatpush3.bf16.msra.mxu0 %v585_v28  ;;  %971 = vmatpush3.bf16.msra.mxu1 %v585_v28  ;;  %p1185_p3 = pnand %p1184_p0, %p1375_p9  ;;  %s1189_s18 = scalar_lea.vmem %s1188_s26, 256 }
  0x6d   : > { %p1190_p7 = scmp.lt.s32.totalorder %s751_s25, %s1188_s26  ;;  %p1191_p10 = scmp.lt.s32.totalorder %s1189_s18, %s1183_s17 }
  0x6e   : > { %p1186_p4 = pneg %p1185_p3 }
  0x6f   : > { %p1192_p13 = por %p1191_p10, %p1190_p7 }
  0x71   : > { %p1193_p12 = pnand %p1192_p13, %p1186_p4 }
 0x12a   : > { %v496_v8 = vpop.f32.mrf.mxu0  ;;  %v542_v9 = vpop.f32.mrf.mxu1 }
 0x12b   : > { %v549_v10 = vsel %vm455_vm1, %v496_v8, -inf  ;;  %v632_v13 = vsel %vm455_vm1, %v542_v9, -inf }
 0x12c   : > { %v962_v11 = vpop.f32.mrf.mxu1  ;;  %550 = vmax.xlane.f32.xlu0 %v549_v10  ;;  %v956_v12 = vpop.f32.mrf.mxu0 }
 0x12e   : > { %v499_v14 = vpop.f32.mrf.mxu0  ;;  %v545_v15 = vpop.f32.mrf.mxu1 }
 0x130   : > { %v963_v16 = vpop.f32.mrf.mxu1  ;;  %633 = vmax.xlane.f32.xlu0 %v632_v13  ;;  %v957_v17 = vpop.f32.mrf.mxu0 }
 0x1b5   : > { %v551_v20 = vpop.xlane.xlu0 %550 }
 0x1b6   : > { %v552_v21 = vmax.f32 %v548_v19, %v551_v20 }
 0x1b8   : > { %v553_v23 = vsub.f32 %v548_v19, %v552_v21  ;;  %630 = vst.msk [vmem:[#allocation2] sm:$0xff] %vm442_vm2, %v552_v21  ;;  %558 = vperm.xlu1 %1057, %v552_v21  }
 0x1b9   : > { %v634_v24 = vpop.xlane.xlu0 %633 }
 0x1ba   : > { %v635_v25 = vmax.f32 %v631_v22, %v634_v24  ;;  %v554_v42 = vmul.f32 1.442695, %v553_v23 }
 0x1bc   : > { %v636_v26 = vsub.f32 %v631_v22, %v635_v25  ;;  %707 = vst.msk [vmem:[#allocation5] sm:$0xff] %vm442_vm2, %v635_v25  ;;  %641 = vperm.xlu1 %1057, %v635_v25  }
 0x1be   : > { %v637_v36 = vmul.f32 1.442695, %v636_v26 }
 0x233   : > { %v559_v29 = vpop.permute.xlu1 %558 }
 0x234   : > { %v561_v30 = vsub.f32 %v496_v8, %v559_v29 }
 0x236   : > { %v562_v31 = vmul.f32 1.442695, %v561_v30 }
 0x237   : > { %v642_v32 = vpop.permute.xlu1 %641 }
 0x238   : > { %1059 = vpow2.f32 %v562_v31  ;;  %v644_v33 = vsub.f32 %v542_v9, %v642_v32 }
 0x23a   : > { %v645_v34 = vmul.f32 1.442695, %v644_v33 }
 0x23c   : > { %1061 = vpow2.f32 %v645_v34 }
 0x23d   : > { %1063 = vpow2.f32 %v637_v36 }
 0x23e   : > { %1065 = vpow2.f32 %v554_v42 }
 0x245   : > { %v1060_v35 = vpop.eup %1059 }
 0x246   : > { %v566_v37 = vsel %vm455_vm1, %v1060_v35, 0.0  ;;  %v579_v38 = vpack.c.bf16 %v1060_v35, %v1060_v35 }
 0x247   : > { %567 = vadd.xlane.f32.xlu1 %v566_v37 }
 0x248   : > { %967 = vmatmul.mubr.msk.bf16.vlgmr.msra.gmra.mxu0 %vm455_vm1, %v579_v38 }
 0x249   : > { %v1062_v39 = vpop.eup %1061 }
 0x24a   : > { %v649_v40 = vsel %vm455_vm1, %v1062_v39, 0.0  ;;  %v661_v41 = vpack.c.bf16 %v1062_v39, %v1062_v39  ;;  %v1064_v43 = vpop.eup %1063 }
 0x24b   : > { %650 = vadd.xlane.f32.xlu0 %v649_v40  ;;  %v1066_v44 = vpop.eup %1065  ;;  %v648_v50 = vmul.f32 %v1064_v43, %v647_v48 }
 0x24c   : > { %973 = vmatmul.mubr.msk.bf16.vlgmr.msra.gmra.mxu1 %vm455_vm1, %v661_v41  ;;  %v565_v46 = vmul.f32 %v1066_v44, %v564_v45 }
 0x258   : > { %657 = vperm.xlu1 %1057, %v1064_v43  }
 0x261   : > { %575 = vperm.xlu0 %1058, %v1066_v44  }
 0x2d0   : > { %v568_v47 = vpop.xlane.xlu1 %567 }
 0x2d1   : > { %v569_v49 = vadd.f32 %v568_v47, %v565_v46 }
 0x2d3   : > { %571 = vst.msk [vmem:[#allocation3] sm:$0xff] %vm442_vm2, %v569_v49 }
 0x2d4   : > { %v651_v51 = vpop.xlane.xlu0 %650  ;;  %v658_v63 = vpop.permute.xlu1 %657 }
 0x2d5   : > { %v652_v52 = vadd.f32 %v651_v51, %v648_v50  ;;  %v660_v3 = vmul.f32 %v658_v63, %v654_v62 }
 0x2d7   : > { %653 = vst.msk [vmem:[#allocation6] sm:$0xff] %vm442_vm2, %v652_v52 }
 0x2da   : > { %v712_v53 = vld [vmem:[#allocation3] sm:$0xff] }
 0x2db   : > { %1067 = vrcp.f32 %v712_v53 }
 0x2dc   : > { %v576_v60 = vpop.permute.xlu0 %575 }
 0x2dd   : > { %v578_v61 = vmul.f32 %v576_v60, %v572_v59 }
 0x2de   : > { %v715_v54 = vld [vmem:[#allocation6] sm:$0xff] }
 0x2df   : > { %1069 = vrcp.f32 %v715_v54 }
 0x2e8   : > { %v1068_v55 = vpop.eup %1067 }
 0x2e9   : > { %722 = vperm.xlu0 %1058, %v1068_v55  }
 0x2ec   : > { %v1070_v57 = vpop.eup %1069 }
 0x2ed   : > { %v718_v58 = vmul.f32 %v1070_v57, %v716_v56 }
 0x2ef   : > { %729 = vperm.xlu0 %1058, %v718_v58  }
 0x308   : > { %v621_v0 = vpop.f32.mrf.mxu0 }
 0x309   : > { %v627_v1 = vadd.f32 %v621_v0, %v578_v61 }
 0x30a   : > { %v968_v2 = vpop.f32.mrf.mxu0 }
 0x30b   : > { %629 = vst.msk [vmem:[#allocation4] sm:$0xff] %vm447_vm4, %v627_v1 }
 0x30c   : > { %v624_v4 = vpop.f32.mrf.mxu0  ;;  %v699_v5 = vpop.f32.mrf.mxu1 }
 0x30d   : > { %v705_v6 = vadd.f32 %v699_v5, %v660_v3 }
 0x30e   : > { %v969_v7 = vpop.f32.mrf.mxu0  ;;  %v974_v8 = vpop.f32.mrf.mxu1 }
 0x30f   : > { %706 = vst.msk [vmem:[#allocation7] sm:$0xff] %vm447_vm4, %v705_v6 }
 0x310   : > { %v702_v9 = vpop.f32.mrf.mxu1 }
 0x312   : > { %v975_v10 = vpop.f32.mrf.mxu1  ;;  %v719_v12 = vld [vmem:[#allocation4] sm:$0xff] }
 0x316   : > { %v726_v13 = vld [vmem:[#allocation7] sm:$0xff] }
 0x364   : > { %v723_v11 = vpop.permute.xlu0 %722 }
 0x365   : > { %v725_v15 = vmul.f32 %v723_v11, %v719_v12 }
 0x36a   : > { %v730_v14 = vpop.permute.xlu0 %729 }
 0x36b   : > { %v732_v16 = vmul.f32 %v730_v14, %v726_v13 }
 0x36d   : > { %v733_v17 = vsub.f32 %v725_v15, %v732_v16 }
 0x36f   : > { %734 = vst.msk [vmem:[%s429_s19] sm:$0xff] %vm447_vm4, %v733_v17 }
 0x370   : > { %1196 = shalt.err (!%p1193_p12)
}
 0x371   : > { %s1197_s30 = scalar_lea.hbm %s748_s15, 128  ;;  %s1201_s22 = scalar_lea.hbm %s1585_s6, 256 }
 0x372   : > { %p1198_p1 = scmp.ne.s32.totalorder %s748_s15, %s1197_s30  ;;  %p1202_p6 = scmp.lt.s32.totalorder %s748_s15, %s1585_s6 }
 0x373   : > { %p1203_p8 = scmp.lt.s32.totalorder %s1201_s22, %s1197_s30 }
 0x374   : > { %p1199_p2 = pnand %p1198_p1, %p1375_p9 }
 0x375   : > { %p1204_p0 = por %p1203_p8, %p1202_p6 }
 0x376   : > { %p1200_p5 = pneg %p1199_p2 }
 0x378   : > { %p1205_p3 = pnand %p1204_p0, %p1200_p5 }
 0x37a   : > { %1208 = shalt.err (!%p1205_p3)
}
 0x37b   : > { %984 = dma.vmem_to_hbm [thread:$0]  (%p1375_p9), %s751_s25, 128, %s748_s15, %s736_s16  }
 0x37c PF: > { %s1604_s9 = sld [smem:[#allocation24_spill]]  ;;  %s762_s21 = sand.u32 1, %s1251_s23  }
 0x37d   : > { %s763_s29 = scalar_lea.sflag [#allocation11], %s762_s21 }
 0x382   : > { %p1605_p4 = scmp.ge.s32.totalorder %s1604_s9, 2 }
 0x384   : > { %p1000_p7 = pnand %p1605_p4, %p1382_p11 }
 0x386   : > { %p1001_p10 = pneg %p1000_p7 }
 0x388   : > { %1246 = dma.done.wait (%p1001_p10), %s763_s29, 128  }
 0x389   : > { %1248 = vsyncadd (%p1001_p10), %s763_s29, 4294967168  ;;  %s29_s28 = sadd.s32 1, %s1604_s9   ;;  %s1606_s2 = sld [smem:[#allocation22_spill]] }
 0x38a   : > { %p26_p13 = scmp.ge.s32.totalorder %s29_s28, 4   ;;  %s1607_s25 = sld [smem:[#allocation26_spill]] }
 0x38b   : > { %s1608_s26 = sld [smem:[#allocation23_spill]]  ;;  %s1610_s23 = smov %s1255_s24 }
 0x38c   : > { %s1609_s27 = sld [smem:[#allocation25_spill]]  ;;  %28 = sbr.rel (!%p26_p13) target bundleno = 13 (0xd), region = 137 }
 0x38f   : > { %s1611_s24 = smov %s1606_s2 }
 0x391   :  { %768 = vsyncpa [#allocation10], 1 }
 0x392   :  { %770 = vsyncpa [#allocation10 + $0x1], 1 }
 0x393   :  { %771 = vsyncpa [#allocation13], 1 }
 0x394   :  { %773 = vsyncpa [#allocation13 + $0x1], 1 }
 0x395   :  { %774 = vsyncpa [#allocation16], 1 }
 0x396   :  { %776 = vsyncpa [#allocation16 + $0x1], 1 }
 0x397   :  { %777 = vsyncpa [#allocation11], 1 }
 0x398   :  { %779 = vsyncpa [#allocation11 + $0x1], 1 }

</bundles_post_ra>
